<compile_context>
chip_gen: v5e
topology: v5e:2x2
jax: 0.10.0
libtpu: 0.0.40
codegen_flags: <defaults>
</compile_context>

<pallas_src>
import functools

import jax
import jax.numpy as jnp
from jax import lax
from jax.experimental import pallas as pl
from jax.experimental.pallas import tpu as pltpu


CONFIG = (("GraphConv", (8, 32)), ("GraphConv", (32, 32)), ("Linear", (32, 4)))


# ---------------------------------------------------------------------------
# Fused forward kernel
# ---------------------------------------------------------------------------
def make_classifier_kernel(config, num_graphs):
    """Builds the fused forward kernel for a (GraphConv*, Linear) config."""
    num_gcn = sum(1 for name, _ in config if name == "GraphConv")

    def kernel(*refs):
        # refs = (idx, S, x, w0, b0, w1, b1, ..., out, h_scratch, sel_scratch)
        idx_ref, s_ref, x_ref = refs[0], refs[1], refs[2]
        out_ref, h_scratch, sel_scratch = refs[-3], refs[-2], refs[-1]
        p_refs = refs[3:-3]

        s = s_ref[...]            # (N, N) normalized, transposed adjacency
        h = x_ref[...]            # (N, F0) node features

        pi = 0
        gi = 0
        for name, (fin, fout) in config:
            w = p_refs[pi][...]
            b = p_refs[pi + 1][...]          # (1, fout), pre-reshaped at init
            pi += 2
            if name == "GraphConv":
                if fin > fout:
                    # project first, then aggregate
                    h = jnp.dot(s,
                                jnp.dot(h, w, preferred_element_type=jnp.float32),
                                preferred_element_type=jnp.float32)
                else:
                    # aggregate first, then project
                    h = jnp.dot(jnp.dot(s, h, preferred_element_type=jnp.float32),
                                w, preferred_element_type=jnp.float32)
                h = jnp.maximum(h + b, 0.0)  # + bias, F.relu
                gi += 1
                if gi == num_gcn:
                    # Batched-graph readout: one node per graph, gathered
                    # in-kernel from VMEM using the SMEM index operand.
                    h_scratch[...] = h
                    for g in range(num_graphs):
                        sel_scratch[pl.ds(g, 1), :] = (
                            h_scratch[pl.ds(idx_ref[g], 1), :])
                    h = sel_scratch[...]     # (num_graphs, fout)
            elif name == "Linear":
                # F.linear: h @ W.T + b  with W of shape (out_feats, in_feats)
                h = lax.dot_general(h, w, (((1,), (1,)), ((), ())),
                                    preferred_element_type=jnp.float32) + b
        out_ref[...] = h

    return kernel


# ---------------------------------------------------------------------------
# Wrapper: graph preprocessing + single fused pallas_call
# ---------------------------------------------------------------------------
def classifier_forward(adj, batch_num_nodes, to_fetch, features, params,
                       config=CONFIG):
    n = adj.shape[0]
    num_graphs = len(batch_num_nodes)

    # --- one-time graph preprocessing, shared by all GraphConv layers -------
    # in-degree (sum over source axis), clamp(min=1), norm = deg**-0.5,
    # S = D^{-1/2} A^T D^{-1/2}  (already transposed -> plain S @ h in-kernel).
    deg = jnp.sum(adj, axis=0)
    norm = lax.rsqrt(jnp.maximum(deg, 1.0))
    s = (norm[:, None] * adj.T) * norm[None, :]

    # readout row indices (to_fetch + per-graph node offset), kept in SMEM
    offsets = jnp.cumsum(
        jnp.asarray((0,) + tuple(batch_num_nodes), jnp.int32))[:-1]
    gather_idx = to_fetch.astype(jnp.int32) + offsets

    gcn_out = [p[1] for name, p in config if name == "GraphConv"][-1]
    out_feats = config[-1][1][1]

    kernel = make_classifier_kernel(config, num_graphs)
    vmem = pl.BlockSpec(memory_space=pltpu.MemorySpace.VMEM)
    smem = pl.BlockSpec(memory_space=pltpu.MemorySpace.SMEM)

    out = pl.pallas_call(
        kernel,
        out_shape=jax.ShapeDtypeStruct((num_graphs, out_feats), jnp.float32),
        in_specs=[smem, vmem, vmem] + [vmem] * len(params),
        out_specs=vmem,
        scratch_shapes=[
            pltpu.VMEM((n, gcn_out), jnp.float32),           # last GCN output
            pltpu.VMEM((num_graphs, gcn_out), jnp.float32),  # gathered rows
        ],
    )(gather_idx, s.astype(jnp.float32), features.astype(jnp.float32), *params)
    return out, out


classifier_forward_jit = jax.jit(
    classifier_forward, static_argnames=("batch_num_nodes", "config"))


# ---------------------------------------------------------------------------
# Parameter init mirroring the PyTorch __init__ shapes
# ---------------------------------------------------------------------------
def init_params(key, config):
    params = []
    for name, p in config:
        key, k1 = jax.random.split(key)
        fan_in, fan_out = p[0], p[1]
        if name == "GraphConv":
            limit = (6.0 / (fan_in + fan_out)) ** 0.5           # xavier_uniform
            w = jax.random.uniform(k1, (fan_in, fan_out), jnp.float32,
                                   -limit, limit)
        elif name == "Linear":
            std = (2.0 / fan_in) ** 0.5                          # kaiming_normal
            w = std * jax.random.normal(k1, (fan_out, fan_in), jnp.float32)
        else:
            raise NotImplementedError(name)
        params.append(w)
        # bias pre-reshaped to (1, fan_out): no per-call reshape in the wrapper
        params.append(jnp.zeros((1, fan_out), jnp.float32))
    return params


# ---------------------------------------------------------------------------
# Main
# ---------------------------------------------------------------------------
if __name__ == "__main__":
    key = jax.random.PRNGKey(0)
    k_adj, k_feat, k_par = jax.random.split(key, 3)

    # two graphs of 8 nodes each, batched as a 16-node block-diagonal adjacency
    nodes_per_graph = 8
    batch_num_nodes = (nodes_per_graph, nodes_per_graph)
    n_total = sum(batch_num_nodes)
    in_feats = CONFIG[0][1][0]

    blocks = []
    for g in range(len(batch_num_nodes)):
        kg = jax.random.fold_in(k_adj, g)
        block = (jax.random.uniform(kg, (nodes_per_graph, nodes_per_graph)) < 0.35)
        blocks.append(block.astype(jnp.float32))
    adj = jax.scipy.linalg.block_diag(*blocks).astype(jnp.float32)   # (16, 16)

    features = jax.random.normal(k_feat, (n_total, in_feats), jnp.float32)  # (16, 8)
    to_fetch = jnp.array([3, 5], dtype=jnp.int32)   # one node per graph

    params = init_params(k_par, CONFIG)

    out, _ = classifier_forward_jit(adj, batch_num_nodes, to_fetch, features,
                                    params)
    out = jax.block_until_ready(out)
    assert out.shape == (len(batch_num_nodes), CONFIG[-1][1][1])
    assert bool(jnp.all(jnp.isfinite(out)))
    print("KERNEL_OK")
</pallas_src>

<mosaic_0001>
module attributes {stable_mosaic.version = 11 : i64} {
  func.func @kernel(%arg0: memref<2xi32, #tpu.memory_space<smem>>, %arg1: memref<16x16xf32, #tpu.memory_space<vmem>>, %arg2: memref<16x8xf32, #tpu.memory_space<vmem>>, %arg3: memref<8x32xf32, #tpu.memory_space<vmem>>, %arg4: memref<1x32xf32, #tpu.memory_space<vmem>>, %arg5: memref<32x32xf32, #tpu.memory_space<vmem>>, %arg6: memref<1x32xf32, #tpu.memory_space<vmem>>, %arg7: memref<4x32xf32, #tpu.memory_space<vmem>>, %arg8: memref<1x4xf32, #tpu.memory_space<vmem>>, %arg9: memref<2x4xf32, #tpu.memory_space<vmem>>, %arg10: memref<16x32xf32, #tpu.memory_space<vmem>>, %arg11: memref<2x32xf32, #tpu.memory_space<vmem>>) attributes {dimension_semantics = [], scalar_prefetch = 0 : i64, scratch_operands = 2 : i64, tpu.core_type = #tpu.core_type<tc>} {
    %c0 = arith.constant 0 : index
    %c0_0 = arith.constant 0 : index
    %0 = vector.load %arg1[%c0, %c0_0] : memref<16x16xf32, #tpu.memory_space<vmem>>, vector<16x16xf32>
    %c0_1 = arith.constant 0 : index
    %c0_2 = arith.constant 0 : index
    %1 = vector.load %arg2[%c0_1, %c0_2] : memref<16x8xf32, #tpu.memory_space<vmem>>, vector<16x8xf32>
    %c0_3 = arith.constant 0 : index
    %c0_4 = arith.constant 0 : index
    %2 = vector.load %arg3[%c0_3, %c0_4] : memref<8x32xf32, #tpu.memory_space<vmem>>, vector<8x32xf32>
    %c0_5 = arith.constant 0 : index
    %c0_6 = arith.constant 0 : index
    %3 = vector.load %arg4[%c0_5, %c0_6] : memref<1x32xf32, #tpu.memory_space<vmem>>, vector<1x32xf32>
    %cst = arith.constant dense<0.000000e+00> : vector<16x8xf32>
    %4 = tpu.matmul %0, %1, %cst {dimension_numbers = #tpu.dot_dimension_numbers<[1], [0], [0], [1], [0, 0, 1, 1], [], []>} : vector<16x16xf32>, vector<16x8xf32>, vector<16x8xf32> -> vector<16x8xf32>
    %cst_7 = arith.constant dense<0.000000e+00> : vector<16x32xf32>
    %5 = tpu.matmul %4, %2, %cst_7 {dimension_numbers = #tpu.dot_dimension_numbers<[1], [0], [0], [1], [0, 0, 1, 1], [], []>} : vector<16x8xf32>, vector<8x32xf32>, vector<16x32xf32> -> vector<16x32xf32>
    %6 = vector.broadcast %3 : vector<1x32xf32> to vector<16x32xf32>
    %7 = arith.addf %5, %6 : vector<16x32xf32>
    %cst_8 = arith.constant 0.000000e+00 : f32
    %8 = vector.broadcast %cst_8 : f32 to vector<16x32xf32>
    %9 = arith.maximumf %7, %8 : vector<16x32xf32>
    %c0_9 = arith.constant 0 : index
    %c0_10 = arith.constant 0 : index
    %10 = vector.load %arg5[%c0_9, %c0_10] : memref<32x32xf32, #tpu.memory_space<vmem>>, vector<32x32xf32>
    %c0_11 = arith.constant 0 : index
    %c0_12 = arith.constant 0 : index
    %11 = vector.load %arg6[%c0_11, %c0_12] : memref<1x32xf32, #tpu.memory_space<vmem>>, vector<1x32xf32>
    %cst_13 = arith.constant dense<0.000000e+00> : vector<16x32xf32>
    %12 = tpu.matmul %0, %9, %cst_13 {dimension_numbers = #tpu.dot_dimension_numbers<[1], [0], [0], [1], [0, 0, 1, 1], [], []>} : vector<16x16xf32>, vector<16x32xf32>, vector<16x32xf32> -> vector<16x32xf32>
    %cst_14 = arith.constant dense<0.000000e+00> : vector<16x32xf32>
    %13 = tpu.matmul %12, %10, %cst_14 {dimension_numbers = #tpu.dot_dimension_numbers<[1], [0], [0], [1], [0, 0, 1, 1], [], []>} : vector<16x32xf32>, vector<32x32xf32>, vector<16x32xf32> -> vector<16x32xf32>
    %14 = vector.broadcast %11 : vector<1x32xf32> to vector<16x32xf32>
    %15 = arith.addf %13, %14 : vector<16x32xf32>
    %cst_15 = arith.constant 0.000000e+00 : f32
    %16 = vector.broadcast %cst_15 : f32 to vector<16x32xf32>
    %17 = arith.maximumf %15, %16 : vector<16x32xf32>
    %c0_16 = arith.constant 0 : index
    %c0_17 = arith.constant 0 : index
    %18 = vector.load %arg10[%c0_16, %c0_17] : memref<16x32xf32, #tpu.memory_space<vmem>>, vector<16x32xf32>
    tpu.vector_store %arg10[%c0_16, %c0_17], %17 {strides = array<i32>} : memref<16x32xf32, #tpu.memory_space<vmem>>, vector<16x32xf32>,
    %c0_18 = arith.constant 0 : index
    %19 = memref.load %arg0[%c0_18] : memref<2xi32, #tpu.memory_space<smem>>
    %20 = arith.index_cast %19 : i32 to index
    %c0_19 = arith.constant 0 : index
    %21 = vector.load %arg10[%20, %c0_19] : memref<16x32xf32, #tpu.memory_space<vmem>>, vector<1x32xf32>
    %c0_20 = arith.constant 0 : index
    %c0_21 = arith.constant 0 : index
    %22 = vector.load %arg11[%c0_20, %c0_21] : memref<2x32xf32, #tpu.memory_space<vmem>>, vector<1x32xf32>
    tpu.vector_store %arg11[%c0_20, %c0_21], %21 {strides = array<i32>} : memref<2x32xf32, #tpu.memory_space<vmem>>, vector<1x32xf32>,
    %c1 = arith.constant 1 : index
    %23 = memref.load %arg0[%c1] : memref<2xi32, #tpu.memory_space<smem>>
    %24 = arith.index_cast %23 : i32 to index
    %c0_22 = arith.constant 0 : index
    %25 = vector.load %arg10[%24, %c0_22] : memref<16x32xf32, #tpu.memory_space<vmem>>, vector<1x32xf32>
    %c1_23 = arith.constant 1 : index
    %c0_24 = arith.constant 0 : index
    %26 = vector.load %arg11[%c1_23, %c0_24] : memref<2x32xf32, #tpu.memory_space<vmem>>, vector<1x32xf32>
    tpu.vector_store %arg11[%c1_23, %c0_24], %25 {strides = array<i32>} : memref<2x32xf32, #tpu.memory_space<vmem>>, vector<1x32xf32>,
    %c0_25 = arith.constant 0 : index
    %c0_26 = arith.constant 0 : index
    %27 = vector.load %arg11[%c0_25, %c0_26] : memref<2x32xf32, #tpu.memory_space<vmem>>, vector<2x32xf32>
    %c0_27 = arith.constant 0 : index
    %c0_28 = arith.constant 0 : index
    %28 = vector.load %arg7[%c0_27, %c0_28] : memref<4x32xf32, #tpu.memory_space<vmem>>, vector<4x32xf32>
    %c0_29 = arith.constant 0 : index
    %c0_30 = arith.constant 0 : index
    %29 = vector.load %arg8[%c0_29, %c0_30] : memref<1x4xf32, #tpu.memory_space<vmem>>, vector<1x4xf32>
    %cst_31 = arith.constant dense<0.000000e+00> : vector<2x4xf32>
    %30 = tpu.matmul %27, %28, %cst_31 {dimension_numbers = #tpu.dot_dimension_numbers<[1], [1], [0], [0], [0, 0, 1, 0], [], []>} : vector<2x32xf32>, vector<4x32xf32>, vector<2x4xf32> -> vector<2x4xf32>
    %31 = vector.broadcast %29 : vector<1x4xf32> to vector<2x4xf32>
    %32 = arith.addf %30, %31 : vector<2x4xf32>
    %c0_32 = arith.constant 0 : index
    %c0_33 = arith.constant 0 : index
    %33 = vector.load %arg9[%c0_32, %c0_33] : memref<2x4xf32, #tpu.memory_space<vmem>>, vector<2x4xf32>
    tpu.vector_store %arg9[%c0_32, %c0_33], %32 {strides = array<i32>} : memref<2x4xf32, #tpu.memory_space<vmem>>, vector<2x4xf32>,
    return
  }
}

</mosaic_0001>

<bundles_post_ra>
// kernel: classifier_forward.1
= control target key start
LH: loop header
LB: loop body
LE: loop exit
PB: predicated region body
PF: predicated region fallthrough
CT: control target
= control target key end

     0   :  { %14 = vsyncpa [#allocation5], 0  ;;  %s260_s12 = smov [#allocation4]   ;;  %s366_s0 = inlined_call_operand.vmem [shape: s32[2], index: 0, kind: input, shape index: {}]   ;;  %s367_s1 = inlined_call_operand.vmem [shape: f32[16,16], index: 1, kind: input, shape index: {}]   ;;  %s368_s2 = inlined_call_operand.vmem [shape: f32[16,8], index: 2, kind: input, shape index: {}]   ;;  %s369_s3 = inlined_call_operand.vmem [shape: f32[8,32], index: 3, kind: input, shape index: {}]   ;;  %s370_s4 = inlined_call_operand.vmem [shape: f32[1,32], index: 4, kind: input, shape index: {}]   ;;  %s371_s5 = inlined_call_operand.vmem [shape: f32[32,32], index: 5, kind: input, shape index: {}]   ;;  %s372_s6 = inlined_call_operand.vmem [shape: f32[1,32], index: 6, kind: input, shape index: {}]   ;;  %s373_s7 = inlined_call_operand.vmem [shape: f32[4,32], index: 7, kind: input, shape index: {}]   ;;  %s374_s8 = inlined_call_operand.vmem [shape: f32[1,4], index: 8, kind: input, shape index: {}]   ;;  %s375_s9 = inlined_call_operand.vmem [shape: f32[2,4], index: 9, kind: output, shape index: {}]  }
   0x1   :  { %s20_s11 = sshll.u32 %s366_s0, 4  ;;  %s21_s11 = int_to_ptr.vmem [resolvable:$true] %s20_s11 }
   0x2   :  { %23 = dma.vmem_to_smem %s21_s11, 16, %s260_s12, [#allocation5]  }
   0x3   :  { %258 = dma.done.wait [#allocation5], 16  }
   0x4   :  { %259 = vsyncadd [#allocation5], 4294967280 }
   0x5   :  { %44 = sfence }
   0x6   :  { %v48_v0 = vld [vmem:[%s368_s2 + $0x8] sm:$0xff]  ;;  %v47_v1 = vld [vmem:[%s368_s2] sm:$0xff]  ;;  %vm51_vm0 = vcmask 130048   ;;  %vm84_vm1 = vcmask 64512   ;;  %v119_v7 = vld [vmem:[%s371_s5 + $0x18] sm:$0xff]  ;;  %vm147_vm2 = vcmask 261120  }
   0x7   :  { %72 = vmatpush.msra.mxu0 %v48_v0  ;;  %v45_v2 = vld [vmem:[%s367_s1] sm:$0xff]  ;;  %v46_v3 = vld [vmem:[%s367_s1 + $0x8] sm:$0xff]  ;;  %v118_v8 = vld [vmem:[%s371_s5 + $0x10] sm:$0xff]  ;;  %166 = vmatpush.msra.mxu3 %v119_v7  ;;  %s239_s11 = sld [smem:[#allocation4 + $0x1]]  ;;  %vm184_vm3 = vcmask 253952   ;;  %vm222_vm4 = vcmask 25600  }
   0x8   :  { %v49_v4 = vld [vmem:[%s369_s3] sm:$0xff]  ;;  %v117_v9 = vld [vmem:[%s371_s5 + $0x8] sm:$0xff] }
   0x9   :  { %73 = vmatpush.msra.mxu0 %v47_v1  ;;  %106 = vmatpush.msra.mxu1 %v49_v4  ;;  %v243_v11 = vld [vmem:[%s370_s4] ss:$0 sm:$0xff] }
   0xa   :  { %231 = vmatmul.msk.f32.vlgmr.msra.gmra.mxu0 %vm51_vm0, %v45_v2  ;;  %167 = vmatpush.msra.mxu3 %v118_v8  ;;  %v116_v17 = vld [vmem:[%s371_s5] sm:$0xff]  ;;  %s181_s5 = sld [smem:[#allocation4]] }
   0xb   :  { %v191_v20 = vld [vmem:[%s373_s7] sm:$0xf] }
   0xc   :  { %168 = vmatpush.msra.mxu3 %v117_v9  ;;  %240 = vmatpush.xpose.msk.msrb.mxu1 %vm147_vm2, %v191_v20  ;;  %v244_v21 = vld [vmem:[%s372_s6] ss:$0 sm:$0xff] }
   0xd   :  { %s187_s12 = scalar_lea.vmem [#allocation2], %s239_s11  ;;  %v245_v31 = vld [vmem:[%s374_s8] ss:$0 sm:$0xff] }
   0xe   :  { %169 = vmatpush.msra.mxu3 %v116_v17 }
  0x10   :  { %s182_s7 = scalar_lea.vmem [#allocation2], %s181_s5 }
  0x12   :  { %232 = vmatmul.msk.f32.gmra.mxu0 %vm51_vm0, %v46_v3 }
  0x87   :  { %v75_v5 = vpop.f32.mrf.mxu0 }
  0x88   :  { %233 = vmatmul.msk.f32.vlgmr.msra.gmra.mxu1 %vm84_vm1, %v75_v5 }
  0x8f   :  { %v78_v6 = vpop.f32.mrf.mxu0 }
  0x90   :  { %234 = vmatmul.msk.f32.gmra.mxu1 %vm84_vm1, %v78_v6 }
 0x105   :  { %v108_v10 = vpop.f32.mrf.mxu1 }
 0x106   :  { %v109_v13 = vadd.f32 %v243_v11, %v108_v10 }
 0x108   :  { %v114_v16 = vmax.f32 %v109_v13, 0.0 }
 0x10d   :  { %v111_v12 = vpop.f32.mrf.mxu1 }
 0x10e   :  { %v112_v14 = vadd.f32 %v243_v11, %v111_v12 }
 0x110   :  { %v115_v15 = vmax.f32 %v112_v14, 0.0 }
 0x112   :  { %135 = vmatpush.msra.mxu2 %v115_v15 }
 0x114   :  { %136 = vmatpush.msra.mxu2 %v114_v16 }
 0x115   :  { %235 = vmatmul.msk.f32.vlgmr.msra.gmra.mxu2 %vm51_vm0, %v45_v2 }
 0x11d   :  { %236 = vmatmul.msk.f32.gmra.mxu2 %vm51_vm0, %v46_v3 }
 0x198   :  { %v138_v18 = vpop.f32.mrf.mxu2 }
 0x199   :  { %237 = vmatmul.msk.f32.vlgmr.msra.gmra.mxu3 %vm147_vm2, %v138_v18 }
 0x1a0   :  { %v141_v19 = vpop.f32.mrf.mxu2 }
 0x1a1   :  { %238 = vmatmul.msk.f32.gmra.mxu3 %vm147_vm2, %v141_v19 }
 0x21c   :  { %v171_v22 = vpop.f32.mrf.mxu3 }
 0x21d   :  { %v172_v23 = vadd.f32 %v244_v21, %v171_v22 }
 0x21f   :  { %v177_v24 = vmax.f32 %v172_v23, 0.0 }
 0x221   :  { %179 = vst.msk [vmem:[#allocation2] sm:$0xff] %vm147_vm2, %v177_v24 }
 0x224   :  { %v174_v25 = vpop.f32.mrf.mxu3 }
 0x225   :  { %v175_v26 = vadd.f32 %v244_v21, %v174_v25 }
 0x227   :  { %v178_v27 = vmax.f32 %v175_v26, 0.0 }
 0x229   :  { %180 = vst.msk [vmem:[#allocation2 + $0x8] sm:$0xff] %vm147_vm2, %v178_v27 }
 0x230   :  { %v183_v28 = vld [vmem:[%s182_s7] sm:$0x1] }
 0x231   :  { %v188_v29 = vld [vmem:[%s187_s12] sm:$0x1]  ;;  %185 = vst.msk [vmem:[#allocation3] sm:$0x1] %vm184_vm3, %v183_v28 }
 0x232   :  { %189 = vst.msk [vmem:[#allocation3 + $0x1] sm:$0x1] %vm184_vm3, %v188_v29 }
 0x239   :  { %v190_v30 = vld [vmem:[#allocation3] sm:$0x3] }
 0x23a   :  { %241 = vmatmul.msk.f32.vlgmr.msrb.gmra.mxu1 %vm147_vm2, %v190_v30 }
 0x2b7   :  { %v219_v32 = vpop.f32.mrf.mxu1 }
 0x2b8   :  { %v220_v33 = vadd.f32 %v245_v31, %v219_v32 }
 0x2ba   :  { %223 = vst.msk [vmem:[%s375_s9] sm:$0x3] %vm222_vm4, %v220_v33 }
 0x2bb   :  { %228 = vsyncpa [#allocation5], 1 }

</bundles_post_ra>
